<compile_context>
chip_gen: v5e
topology: v5e:2x2
jax: 0.10.0
libtpu: 0.0.40
codegen_flags: <defaults>
</compile_context>

<pallas_src>
import jax
import jax.numpy as jnp
from jax.experimental import pallas as pl
from jax.experimental.pallas import tpu as pltpu


def _conv1x1_sigmoid_kernel(x_ref, w_ref, o_ref):
    # x_ref: (BN, C_in, T)   w_ref: (C_out, C_in)   o_ref: (BN, C_out, T)
    w = w_ref[...]
    # Static unroll over the (small, <=8) batch block: each step is a
    # lane-dense (C_out, C_in) @ (C_in, T) MXU matmul with f32 accumulation
    # and a fused sigmoid.  (A VPU broadcast-MAC would also work at these tiny
    # channel counts, but the kernel is HBM-bound so the MXU is off the
    # critical path.)
    for b in range(x_ref.shape[0]):
        acc = jnp.dot(w, x_ref[b], preferred_element_type=jnp.float32)
        o_ref[b] = jax.nn.sigmoid(acc).astype(o_ref.dtype)


def _vmem_budget_bytes():
    """Generation-aware usable-VMEM budget (conservative)."""
    phys = None
    try:
        info = pltpu.get_tpu_info()
        phys = getattr(info, "vmem_capacity_bytes", None)
    except Exception:
        phys = None
    if not phys or phys <= 0:
        phys = 64 * 1024 * 1024  # v7x-safe lower bound (64 MiB per TC)
    # leave 25% headroom for compiler internals; never ask for >96 MiB
    return min(int(phys * 0.75), 96 * 1024 * 1024)


def container_conv_forward(x_nchw, weight_oihw):
    """sigmoid(conv1x1(x)).  x_nchw: (N, C_in, H, W); weight: (C_out, C_in, 1, 1)."""
    N, C_in, H, W = x_nchw.shape
    C_out = weight_oihw.shape[0]
    HW = H * W
    dtype = x_nchw.dtype
    dtype_bytes = jnp.dtype(dtype).itemsize

    # Free reshapes (no transposes, no extra HBM traffic).
    x = x_nchw.reshape(N, C_in, HW)                       # (N, C_in, HW)
    w = weight_oihw.reshape(C_out, C_in).astype(dtype)    # (C_out, C_in)

    # ---------------- tiling from a VMEM budget ----------------
    vmem_budget = _vmem_budget_bytes()
    # Double-buffered (x block + out block) must fit; keep a single step's
    # combined block <= 16 MiB so 2x buffering fits every generation.
    block_budget = min(vmem_budget // 2, 16 * 1024 * 1024)
    row_bytes = (C_in + C_out) * dtype_bytes              # bytes per spatial column

    max_t = max(128, block_budget // row_bytes)           # spatial cols per image block
    if HW <= max_t:
        t = HW                                            # full-dim block: always legal
    else:
        # Prefer the largest multiple-of-128 divisor of HW (no ragged edge,
        # no wrapper pad/slice).
        t_cap = max(128, (max_t // 128) * 128)
        t = 0
        cand = t_cap
        while cand >= 128:
            if HW % cand == 0:
                t = cand
                break
            cand -= 128
        if t == 0:
            # Rare fallback: ragged cdiv grid.  Out-of-bounds output columns
            # are dropped by the pipeline; out-of-bounds input columns only
            # feed those dropped columns (columnwise-independent compute).
            t = t_cap
    n_hw = pl.cdiv(HW, t)

    # Batch block: amortize per-step overhead when a single image tile is small.
    bn_cap = max(1, block_budget // max(1, row_bytes * t))
    bn_cap = min(bn_cap, N, 8)                            # bound the in-kernel unroll
    BN = 1
    for d in range(bn_cap, 0, -1):                        # largest divisor of N <= cap
        if N % d == 0:
            BN = d
            break
    n_nb = N // BN

    # ---------------- grid: put the longer axis first (v7x megacore) ----------------
    if n_hw >= n_nb:
        grid = (n_hw, n_nb)
        x_map = lambda j, b: (b, 0, j)
        o_map = lambda j, b: (b, 0, j)
    else:
        grid = (n_nb, n_hw)
        x_map = lambda b, j: (b, 0, j)
        o_map = lambda b, j: (b, 0, j)

    out = pl.pallas_call(
        _conv1x1_sigmoid_kernel,
        out_shape=jax.ShapeDtypeStruct((N, C_out, HW), dtype),
        grid_spec=pltpu.PrefetchScalarGridSpec(
            num_scalar_prefetch=0,
            grid=grid,
            in_specs=[
                # x block: (BN, C_in, t); C_in equals the full dim (legal) and
                # t is either the full HW or a multiple of 128 -> lane-dense.
                pl.BlockSpec((BN, C_in, t), x_map),
                # weight: tiny, resident in VMEM for the whole kernel.
                pl.BlockSpec(memory_space=pltpu.MemorySpace.VMEM),
            ],
            out_specs=pl.BlockSpec((BN, C_out, t), o_map),
        ),
        compiler_params=pltpu.CompilerParams(
            dimension_semantics=("parallel", "parallel"),
            vmem_limit_bytes=int(vmem_budget),
        ),
    )(x, w)

    # Free reshape back to NCHW (contiguous).
    return out.reshape(N, C_out, H, W)


def reference_forward(x_nchw, weight_oihw):
    # Pure-JAX reference: 1x1 conv as einsum over the channel dim, then sigmoid.
    w = weight_oihw.reshape(weight_oihw.shape[0], weight_oihw.shape[1])  # (C_out, C_in)
    out = jnp.einsum("nchw,oc->nohw", x_nchw, w)
    return jax.nn.sigmoid(out)


if __name__ == "__main__":
    key = jax.random.PRNGKey(0)
    k_x, k_w = jax.random.split(key)

    N, C_in, C_out, H, W = 2, 4, 8, 16, 16

    x = jax.random.normal(k_x, (N, C_in, H, W), dtype=jnp.float32)
    # Deterministic Conv2d weight init (synthetic, kaiming-uniform-like bound).
    bound = 1.0 / (C_in ** 0.5)
    weight = jax.random.uniform(
        k_w, (C_out, C_in, 1, 1), dtype=jnp.float32, minval=-bound, maxval=bound
    )

    out = container_conv_forward(x, weight)
    out = jax.block_until_ready(out)

    ref = reference_forward(x, weight)
    assert out.shape == (N, C_out, H, W)
    assert jnp.allclose(out, ref, atol=1e-5, rtol=1e-5)

    print("KERNEL_OK")
</pallas_src>

<mosaic_0001>
module attributes {stable_mosaic.version = 11 : i64} {
  func.func @_conv1x1_sigmoid_kernel(%arg0: i32, %arg1: i32, %arg2: memref<2x4x256xf32, #tpu.memory_space<vmem>>, %arg3: memref<8x4xf32, #tpu.memory_space<vmem>>, %arg4: memref<2x8x256xf32, #tpu.memory_space<vmem>>) attributes {dimension_semantics = [#tpu.dimension_semantics<parallel>, #tpu.dimension_semantics<parallel>], iteration_bounds = array<i64: 1, 1>, scalar_prefetch = 0 : i64, scratch_operands = 0 : i64, tpu.core_type = #tpu.core_type<tc>, window_params = [{transform_indices = @transform_0, window_bounds = array<i64: 2, 4, 256>}, {pipeline_mode = #tpu.pipeline_mode<synchronous>, transform_indices = @transform_1, window_bounds = array<i64: 8, 4>}, {transform_indices = @transform_2, window_bounds = array<i64: 2, 8, 256>}]} {
    %c0 = arith.constant 0 : index
    %c0_0 = arith.constant 0 : index
    %0 = vector.load %arg3[%c0, %c0_0] : memref<8x4xf32, #tpu.memory_space<vmem>>, vector<8x4xf32>
    %c0_1 = arith.constant 0 : index
    %c0_2 = arith.constant 0 : index
    %c0_3 = arith.constant 0 : index
    %1 = vector.load %arg2[%c0_1, %c0_2, %c0_3] : memref<2x4x256xf32, #tpu.memory_space<vmem>>, vector<1x4x256xf32>
    %2 = vector.shape_cast %1 : vector<1x4x256xf32> to vector<4x256xf32>
    %cst = arith.constant dense<0.000000e+00> : vector<8x256xf32>
    %3 = tpu.matmul %0, %2, %cst {dimension_numbers = #tpu.dot_dimension_numbers<[1], [0], [0], [1], [0, 0, 1, 1], [], []>} : vector<8x4xf32>, vector<4x256xf32>, vector<8x256xf32> -> vector<8x256xf32>
    %4 = arith.negf %3 : vector<8x256xf32>
    %5 = math.exp %4 : vector<8x256xf32>
    %cst_4 = arith.constant 1.000000e+00 : f32
    %6 = vector.broadcast %cst_4 : f32 to vector<8x256xf32>
    %7 = arith.addf %6, %5 : vector<8x256xf32>
    %8 = arith.divf %6, %7 : vector<8x256xf32>
    %c0_5 = arith.constant 0 : index
    %c0_6 = arith.constant 0 : index
    %c0_7 = arith.constant 0 : index
    %9 = vector.load %arg4[%c0_5, %c0_6, %c0_7] : memref<2x8x256xf32, #tpu.memory_space<vmem>>, vector<1x8x256xf32>
    %10 = vector.shape_cast %9 : vector<1x8x256xf32> to vector<8x256xf32>
    %11 = vector.shape_cast %8 : vector<8x256xf32> to vector<1x8x256xf32>
    tpu.vector_store %arg4[%c0_5, %c0_6, %c0_7], %11 {strides = array<i32>} : memref<2x8x256xf32, #tpu.memory_space<vmem>>, vector<1x8x256xf32>,
    %c1 = arith.constant 1 : index
    %c0_8 = arith.constant 0 : index
    %c0_9 = arith.constant 0 : index
    %12 = vector.load %arg2[%c1, %c0_8, %c0_9] : memref<2x4x256xf32, #tpu.memory_space<vmem>>, vector<1x4x256xf32>
    %13 = vector.shape_cast %12 : vector<1x4x256xf32> to vector<4x256xf32>
    %cst_10 = arith.constant dense<0.000000e+00> : vector<8x256xf32>
    %14 = tpu.matmul %0, %13, %cst_10 {dimension_numbers = #tpu.dot_dimension_numbers<[1], [0], [0], [1], [0, 0, 1, 1], [], []>} : vector<8x4xf32>, vector<4x256xf32>, vector<8x256xf32> -> vector<8x256xf32>
    %15 = arith.negf %14 : vector<8x256xf32>
    %16 = math.exp %15 : vector<8x256xf32>
    %cst_11 = arith.constant 1.000000e+00 : f32
    %17 = vector.broadcast %cst_11 : f32 to vector<8x256xf32>
    %18 = arith.addf %17, %16 : vector<8x256xf32>
    %19 = arith.divf %17, %18 : vector<8x256xf32>
    %c1_12 = arith.constant 1 : index
    %c0_13 = arith.constant 0 : index
    %c0_14 = arith.constant 0 : index
    %20 = vector.load %arg4[%c1_12, %c0_13, %c0_14] : memref<2x8x256xf32, #tpu.memory_space<vmem>>, vector<1x8x256xf32>
    %21 = vector.shape_cast %20 : vector<1x8x256xf32> to vector<8x256xf32>
    %22 = vector.shape_cast %19 : vector<8x256xf32> to vector<1x8x256xf32>
    tpu.vector_store %arg4[%c1_12, %c0_13, %c0_14], %22 {strides = array<i32>} : memref<2x8x256xf32, #tpu.memory_space<vmem>>, vector<1x8x256xf32>,
    return
  }
  func.func @transform_0(%arg0: i32, %arg1: i32) -> (i32, i32, i32) {
    %c0_i32 = arith.constant 0 : i32
    %c0_i32_0 = arith.constant 0 : i32
    return %arg1, %c0_i32, %arg0 : i32, i32, i32
  }
  func.func @transform_1(%arg0: i32, %arg1: i32) -> (i32, i32) {
    %c0_i32 = arith.constant 0 : i32
    %c0_i32_0 = arith.constant 0 : i32
    %c0_i32_1 = arith.constant 0 : i32
    return %c0_i32, %c0_i32_0 : i32, i32
  }
  func.func @transform_2(%arg0: i32, %arg1: i32) -> (i32, i32, i32) {
    %c0_i32 = arith.constant 0 : i32
    %c0_i32_0 = arith.constant 0 : i32
    return %arg1, %c0_i32, %arg0 : i32, i32, i32
  }
}

</mosaic_0001>

<bundles_post_ra>
// kernel: tpu_custom_call.1
= control target key start
LH: loop header
LB: loop body
LE: loop exit
PB: predicated region body
PF: predicated region fallthrough
CT: control target
= control target key end

     0   :  { %7 = vsyncpa [#allocation3], 0  ;;  %s349_s0 = inlined_call_operand.hbm [shape: f32[2,4,256], index: 0, kind: input, shape index: {}]   ;;  %s350_s1 = inlined_call_operand.vmem [shape: f32[8,4], index: 1, kind: input, shape index: {}]   ;;  %s351_s2 = inlined_call_operand.hbm [shape: f32[2,8,256], index: 2, kind: output, shape index: {}]  }
   0x1   :  { %8 = vsyncpa [#allocation4], 0  ;;  %s13_s11 = sshll.u32 %s349_s0, 4  ;;  %s319_s12 = smov [#allocation2]   ;;  %s14_s11 = int_to_ptr.hbm [resolvable:$true] %s13_s11 }
   0x2   :  { %s15_s13 = sshll.u32 %s319_s12, 4  ;;  %s320_s14 = smov 128   ;;  %s16_s13 = int_to_ptr.vmem [resolvable:$true] %s15_s13 }
   0x3   :  { %s321_s15 = smov 8  }
   0x4   :  { %21 = dma.hbm_to_vmem [thread:$0]  %s14_s11, 256, %s16_s13, [#allocation3], %s320_s14, %s320_s14, %s321_s15  }
   0x5   :  { %315 = dma.done.wait [#allocation3], 256  }
   0x6   :  { %316 = vsyncadd [#allocation3], 4294967040  ;;  %v29_v0 = vld [vmem:[#allocation2] sm:$0xff]  ;;  %vm38_vm0 = vcmask 1043456   ;;  %v124_v1 = vld [vmem:[#allocation2 + $0x8] sm:$0xff]  ;;  %vm34_vm1 = vcmask 31744  }
   0x7   :  { %31 = vst [vmem:[#allocation1] ss:$2 sm:$0xff] %v29_v0  ;;  %v28_v2 = vld [vmem:[%s350_s1] sm:$0xff]  ;;  %s322_s0 = smov [#allocation5]   ;;  %s220_s20 = sshll.u32 %s351_s2, 4  ;;  %s221_s20 = int_to_ptr.hbm [resolvable:$true] %s220_s20 }
   0x8   :  { %s218_s1 = sshll.u32 %s322_s0, 4  ;;  %s323_s21 = smov 256   ;;  %s219_s1 = int_to_ptr.vmem [resolvable:$true] %s218_s1 }
   0x9   :  { %s324_s2 = smov 16  }
   0xe   :  { %v32_v3 = vld.sshfl [vmem:[#allocation1] sm:$0xff pattern:$0x75316420]  ;;  %v33_v4 = vld.sshfl [vmem:[#allocation1 + $0x8] sm:$0xff pattern:$0x75316420] }
   0xf   :  { %233 = vmatpush.msk.msra.mxu0 %vm38_vm0, %v32_v3  ;;  %235 = vmatpush.msk.msra.mxu1 %vm38_vm0, %v33_v4  ;;  %126 = vst [vmem:[#allocation1] ss:$2 sm:$0xff] %v124_v1 }
  0x10   :  { %234 = vmatmul.msk.f32.vlgmr.msra.gmra.mxu0 %vm34_vm1, %v28_v2  ;;  %236 = vmatmul.msk.f32.vlgmr.msra.gmra.mxu1 %vm34_vm1, %v28_v2 }
  0x16   :  { %v127_v5 = vld.sshfl [vmem:[#allocation1] sm:$0xff pattern:$0x75316420]  ;;  %v128_v6 = vld.sshfl [vmem:[#allocation1 + $0x8] sm:$0xff pattern:$0x75316420] }
  0x17   :  { %239 = vmatpush.msk.msra.mxu2 %vm38_vm0, %v127_v5  ;;  %241 = vmatpush.msk.msra.mxu3 %vm38_vm0, %v128_v6 }
  0x18   :  { %240 = vmatmul.msk.f32.vlgmr.msra.gmra.mxu2 %vm34_vm1, %v28_v2  ;;  %242 = vmatmul.msk.f32.vlgmr.msra.gmra.mxu3 %vm34_vm1, %v28_v2 }
  0x8d   :  { %v60_v7 = vpop.f32.mrf.mxu0  ;;  %v80_v8 = vpop.f32.mrf.mxu1 }
  0x8e   :  { %v237_v9 = vmul.f32 -1.442695, %v60_v7  ;;  %v238_v10 = vmul.f32 -1.442695, %v80_v8 }
  0x90   :  { %251 = vpow2.f32 %v237_v9 }
  0x91   :  { %253 = vpow2.f32 %v238_v10 }
  0x96   :  { %v252_v11 = vpop.eup %251 }
  0x97   :  { %v254_v12 = vpop.eup %253  ;;  %v89_v13 = vadd.f32 1.0, %v252_v11 }
  0x98   :  { %v90_v14 = vadd.f32 1.0, %v254_v12 }
  0x99   :  { %255 = vrcp.f32 %v89_v13  ;;  %vm96_vm2 = vweird.f32 %v89_v13  ;;  %v102_v22 = vand.u32 2147483648, %v89_v13  ;;  %v100_v25 = vand.u32 2147483647, %v89_v13 }
  0x9a   :  { %257 = vrcp.f32 %v90_v14  ;;  %v117_v26 = vand.u32 2147483648, %v90_v14  ;;  %vm111_vm4 = vweird.f32 %v90_v14  ;;  %v115_v28 = vand.u32 2147483647, %v90_v14 }
  0x9b   :  { %v150_v15 = vpop.f32.mrf.mxu2  ;;  %v170_v16 = vpop.f32.mrf.mxu3  ;;  %v103_v32 = vor.u32 1.1754944e-38, %v102_v22  ;;  %vm101_vm7 = vcmp.eq.f32.partialorder %v100_v25, 8.507059e+37 }
  0x9c   :  { %v243_v17 = vmul.f32 -1.442695, %v150_v15  ;;  %v244_v18 = vmul.f32 -1.442695, %v170_v16  ;;  %v118_v36 = vor.u32 1.1754944e-38, %v117_v26  ;;  %vm116_vm9 = vcmp.eq.f32.partialorder %v115_v28, 8.507059e+37 }
  0x9e   :  { %259 = vpow2.f32 %v243_v17 }
  0x9f   :  { %v256_v19 = vpop.eup %255  ;;  %261 = vpow2.f32 %v244_v18 }
  0xa0   :  { %v258_v20 = vpop.eup %257  ;;  %v92_v21 = vmul.f32 %v256_v19, %v89_v13  ;;  %vm97_vm3 = vweird.f32 %v256_v19 }
  0xa1   :  { %v107_v23 = vmul.f32 %v258_v20, %v90_v14  ;;  %vm112_vm5 = vweird.f32 %v258_v20  ;;  %vm98_vm6 = vmor %vm96_vm2, %vm97_vm3 }
  0xa2   :  { %v93_v24 = vsub.f32 1.0, %v92_v21  ;;  %vm113_vm8 = vmor %vm111_vm4, %vm112_vm5 }
  0xa3   :  { %v108_v27 = vsub.f32 1.0, %v107_v23 }
  0xa4   :  { %v260_v29 = vpop.eup %259  ;;  %v94_v30 = vmul.f32 %v256_v19, %v93_v24 }
  0xa5   :  { %v262_v31 = vpop.eup %261  ;;  %v109_v33 = vmul.f32 %v258_v20, %v108_v27  ;;  %v179_v34 = vadd.f32 1.0, %v260_v29 }
  0xa6   :  { %v95_v35 = vadd.f32 %v256_v19, %v94_v30  ;;  %v180_v37 = vadd.f32 1.0, %v262_v31 }
  0xa7   :  { %v110_v38 = vadd.f32 %v258_v20, %v109_v33  ;;  %263 = vrcp.f32 %v179_v34  ;;  %v192_v48 = vand.u32 2147483648, %v179_v34  ;;  %v190_v51 = vand.u32 2147483647, %v179_v34 }
  0xa8   :  { %v99_v39 = vsel %vm98_vm6, %v256_v19, %v95_v35  ;;  %265 = vrcp.f32 %v180_v37  ;;  %v207_v52 = vand.u32 2147483648, %v180_v37  ;;  %v205_v54 = vand.u32 2147483647, %v180_v37 }
  0xa9   :  { %v104_v40 = vsel %vm101_vm7, %v103_v32, %v99_v39  ;;  %v114_v41 = vsel %vm113_vm8, %v258_v20, %v110_v38  ;;  %vm186_vm12 = vweird.f32 %v179_v34  ;;  %v193_v56 = vor.u32 1.1754944e-38, %v192_v48 }
  0xaa   :  { %121 = vst [vmem:[#allocation5] sm:$0xff] %v104_v40  ;;  %v119_v42 = vsel %vm116_vm9, %v118_v36, %v114_v41  ;;  %vm201_vm14 = vweird.f32 %v180_v37  ;;  %vm191_vm15 = vcmp.eq.f32.partialorder %v190_v51, 8.507059e+37  ;;  %v208_v59 = vor.u32 1.1754944e-38, %v207_v52 }
  0xab   :  { %122 = vst [vmem:[#allocation5 + $0x8] sm:$0xff] %v119_v42  ;;  %vm206_vm1 = vcmp.eq.f32.partialorder %v205_v54, 8.507059e+37 }
  0xad   :  { %v264_v43 = vpop.eup %263 }
  0xae   :  { %v266_v44 = vpop.eup %265  ;;  %v182_v45 = vmul.f32 %v264_v43, %v179_v34  ;;  %vm187_vm10 = vweird.f32 %v264_v43 }
  0xaf   :  { %v197_v46 = vmul.f32 %v266_v44, %v180_v37  ;;  %vm202_vm11 = vweird.f32 %v266_v44  ;;  %vm188_vm13 = vmor %vm186_vm12, %vm187_vm10 }
  0xb0   :  { %v183_v47 = vsub.f32 1.0, %v182_v45  ;;  %vm203_vm0 = vmor %vm201_vm14, %vm202_vm11 }
  0xb1   :  { %v198_v49 = vsub.f32 1.0, %v197_v46 }
  0xb2   :  { %v184_v50 = vmul.f32 %v264_v43, %v183_v47 }
  0xb3   :  { %v199_v53 = vmul.f32 %v266_v44, %v198_v49 }
  0xb4   :  { %v185_v55 = vadd.f32 %v264_v43, %v184_v50 }
  0xb5   :  { %v200_v57 = vadd.f32 %v266_v44, %v199_v53 }
  0xb6   :  { %v189_v58 = vsel %vm188_vm13, %v264_v43, %v185_v55 }
  0xb7   :  { %v194_v60 = vsel %vm191_vm15, %v193_v56, %v189_v58  ;;  %v204_v61 = vsel %vm203_vm0, %v266_v44, %v200_v57 }
  0xb8   :  { %212 = vst [vmem:[#allocation5 + $0x10] sm:$0xff] %v194_v60  ;;  %v209_v62 = vsel %vm206_vm1, %v208_v59, %v204_v61 }
  0xb9   :  { %213 = vst [vmem:[#allocation5 + $0x18] sm:$0xff] %v209_v62 }
  0xba   :  { %226 = dma.vmem_to_hbm [thread:$0]  %s219_s1, 512, %s221_s20, [#allocation4], %s323_s21, %s323_s21, %s324_s2  }
  0xbb   :  { %317 = dma.done.wait [#allocation4], 512  }
  0xbc   :  { %318 = vsyncadd [#allocation4], 4294966784 }
  0xbd   :  { %231 = vsyncpa [#allocation3], 1 }
  0xbe   :  { %232 = vsyncpa [#allocation4], 1 }

</bundles_post_ra>
